<compile_context>
chip_gen: v7x
topology: tpu7x:2x2x1
jax: 0.10.0
libtpu: 0.0.40
codegen_flags: <defaults>
</compile_context>

<pallas_src>
import functools
import math

import jax
import jax.numpy as jnp
from jax.experimental import pallas as pl
from jax.experimental.pallas import tpu as pltpu


_LANES = 512            # lane-dense last dim (multiple of 128 -> unmasked vld)
_MAX_TILE_ROWS = 1024   # 1024 x 512 x 4B = 2 MiB per operand tile
_NUM_SPLITS = 2         # leading "parallel" axis (2 TensorCores on v7x)


def _cdiv(a, b):
    return -(-a // b)


def _round_up(a, b):
    return _cdiv(a, b) * b


def _content_loss_kernel(x_ref, t_ref, out_ref, acc_ref, *, scale, valid_rows,
                         tiles_per_split, need_mask):
    """One (tile_rows, LANES) tile of the squared-difference reduction.

    x_ref   : VMEM (tile_rows, LANES)  input feature-map tile
    t_ref   : VMEM (tile_rows, LANES)  raw (unscaled) target tile
    out_ref : VMEM (1, 8, 128) f32     per-split partial loss (element [0,0,0])
    acc_ref : SMEM (1,) f32            running sum of (x - t)^2 for this split
    scale, valid_rows, tiles_per_split, need_mask : compile-time constants
    """
    i = pl.program_id(1)

    @pl.when(i == 0)
    def _():
        acc_ref[0] = jnp.float32(0.0)

    x = x_ref[...].astype(jnp.float32)
    t = t_ref[...].astype(jnp.float32)
    d = x - t

    if need_mask:
        tile_rows = x_ref.shape[0]
        # Unclamped global tile index -> rows beyond the real data (including
        # fully out-of-range "dummy" grid steps) contribute exactly zero.
        tile_idx = pl.program_id(0) * tiles_per_split + i
        row_start = tile_idx * tile_rows
        row_ids = row_start + jax.lax.broadcasted_iota(jnp.int32, x_ref.shape, 0)
        d = jnp.where(row_ids < valid_rows, d, jnp.float32(0.0))

    acc_ref[0] += jnp.sum(d * d)

    @pl.when(i == pl.num_programs(1) - 1)
    def _():
        out_ref[...] = jnp.full(out_ref.shape,
                                acc_ref[0] * jnp.float32(scale),
                                dtype=jnp.float32)


def content_loss_forward(x_nchw, target_nchw, weight):
    """Returns (output, loss) matching ContentLoss.forward + self.loss.

    output is the un-touched input (pass-through, never round-tripped through
    the kernel); loss = mean((x*weight - target*weight)^2).
    """
    assert x_nchw.shape == target_nchw.shape
    n = math.prod(x_nchw.shape)

    xf = x_nchw.reshape(-1)
    tf = target_nchw.reshape(-1)
    rem = n % _LANES
    if rem:
        # Rare fallback (element count not a multiple of 128 lanes): pad the
        # tail with zeros so a lane-dense 2-D view exists.  Zeros in both
        # operands contribute 0 to the squared-difference sum.
        pad = _LANES - rem
        xf = jnp.pad(xf, (0, pad))
        tf = jnp.pad(tf, (0, pad))
    rows = _cdiv(n, _LANES)
    x2 = xf.reshape(rows, _LANES)
    t2 = tf.reshape(rows, _LANES)

    # --- choose a lane-dense tiling (no padding copy; mask in-kernel) -------
    if rows < 16:
        # Tiny input: one full-array block (block dim == array dim is legal
        # even when not a multiple of 8), single grid step, no mask.
        num_splits = 1
        tile_rows = rows
    else:
        num_splits = _NUM_SPLITS
        tile_rows = min(_MAX_TILE_ROWS, _round_up(_cdiv(rows, num_splits), 8))

    total_tiles = _cdiv(rows, tile_rows)
    tiles_per_split = _cdiv(total_tiles, num_splits)
    # Mask needed iff the rectangular grid over-covers the real rows
    # (partial edge tile and/or dummy grid steps past the end).
    need_mask = num_splits * tiles_per_split * tile_rows > rows
    last_tile = total_tiles - 1

    def idx_map(s, i):
        t = s * tiles_per_split + i
        if need_mask:
            t = jnp.minimum(t, last_tile)   # keep every DMA in bounds
        return (t, 0)

    # MSE(x*w, t*w) == w^2 * mean((x-t)^2); bake w^2/N as a constant.
    scale = float(weight) * float(weight) / float(n)
    kernel = functools.partial(_content_loss_kernel, scale=scale,
                               valid_rows=rows,
                               tiles_per_split=tiles_per_split,
                               need_mask=need_mask)

    partials = pl.pallas_call(
        kernel,
        grid=(num_splits, tiles_per_split),
        in_specs=[
            pl.BlockSpec((tile_rows, _LANES), idx_map),
            pl.BlockSpec((tile_rows, _LANES), idx_map),
        ],
        out_specs=pl.BlockSpec((1, 8, 128), lambda s, i: (s, 0, 0)),
        out_shape=jax.ShapeDtypeStruct((num_splits, 8, 128), jnp.float32),
        scratch_shapes=[pltpu.SMEM((1,), jnp.float32)],
        compiler_params=pltpu.CompilerParams(
            dimension_semantics=("parallel", "arbitrary")),
    )(x2, t2)

    loss = jnp.sum(partials[:, 0, 0])
    # Pass-through output: return the input directly (no extra HBM traffic).
    return x_nchw, loss


if __name__ == "__main__":
    key = jax.random.PRNGKey(0)
    kx, kt, kx2, kt2, kx3, kt3 = jax.random.split(key, 6)
    weight = 0.5

    # 1) Primary check: small NCHW feature maps (single-tile path).
    B, C, H, W = 2, 4, 16, 16
    x = jax.random.normal(kx, (B, C, H, W), dtype=jnp.float32)
    target = jax.random.normal(kt, (B, C, H, W), dtype=jnp.float32)
    output, loss = content_loss_forward(x, target, weight)
    jax.block_until_ready((output, loss))
    ref_loss = jnp.mean((x * weight - target * weight) ** 2)
    assert jnp.allclose(output, x), "pass-through output mismatch"
    assert jnp.allclose(loss, ref_loss, rtol=1e-5, atol=1e-6), "loss mismatch"

    # 2) Element count NOT divisible by 128 (padded-tail fallback path).
    x_odd = jax.random.normal(kx2, (1, 3, 7, 5), dtype=jnp.float32)
    t_odd = jax.random.normal(kt2, (1, 3, 7, 5), dtype=jnp.float32)
    out_odd, loss_odd = content_loss_forward(x_odd, t_odd, weight)
    jax.block_until_ready((out_odd, loss_odd))
    ref_odd = jnp.mean((x_odd * weight - t_odd * weight) ** 2)
    assert jnp.allclose(out_odd, x_odd), "pass-through mismatch (odd shape)"
    assert jnp.allclose(loss_odd, ref_odd, rtol=1e-5, atol=1e-6), \
        "loss mismatch (odd shape)"

    # 3) Larger VGG-like feature map: exercises the masked / clamped
    #    multi-tile path on both splits without any wrapper-side padding.
    x_big = jax.random.normal(kx3, (2, 5, 256, 512), dtype=jnp.float32)
    t_big = jax.random.normal(kt3, (2, 5, 256, 512), dtype=jnp.float32)
    w_big = 2.0
    out_big, loss_big = content_loss_forward(x_big, t_big, w_big)
    jax.block_until_ready((out_big, loss_big))
    ref_big = jnp.mean((x_big * w_big - t_big * w_big) ** 2)
    assert jnp.allclose(out_big, x_big), "pass-through mismatch (big shape)"
    assert jnp.allclose(loss_big, ref_big, rtol=1e-4, atol=1e-6), \
        "loss mismatch (big shape)"

    print("KERNEL_OK")
</pallas_src>

<mosaic_0001>
module attributes {stable_mosaic.version = 11 : i64} {
  func.func @_content_loss_kernel(%arg0: i32, %arg1: i32, %arg2: memref<4x512xf32, #tpu.memory_space<vmem>>, %arg3: memref<4x512xf32, #tpu.memory_space<vmem>>, %arg4: memref<1x8x128xf32, #tpu.memory_space<vmem>>, %arg5: memref<1xf32, #tpu.memory_space<smem>>) attributes {dimension_semantics = [#tpu.dimension_semantics<parallel>, #tpu.dimension_semantics<arbitrary>], iteration_bounds = array<i64: 1, 1>, scalar_prefetch = 0 : i64, scratch_operands = 1 : i64, tpu.core_type = #tpu.core_type<tc>, window_params = [{transform_indices = @transform_0, window_bounds = array<i64: 4, 512>}, {transform_indices = @transform_1, window_bounds = array<i64: 4, 512>}, {transform_indices = @transform_2, window_bounds = array<i64: 1, 8, 128>}]} {
    %c0_i32 = arith.constant 0 : i32
    %0 = arith.cmpi eq, %arg1, %c0_i32 : i32
    %1 = arith.extui %0 : i1 to i32
    %c0_i32_0 = arith.constant 0 : i32
    %2 = arith.cmpi ne, %1, %c0_i32_0 : i32
    scf.if %2 {
      %cst_8 = arith.constant 0.000000e+00 : f32
      %c0_9 = arith.constant 0 : index
      %17 = memref.load %arg5[%c0_9] : memref<1xf32, #tpu.memory_space<smem>>
      memref.store %cst_8, %arg5[%c0_9] : memref<1xf32, #tpu.memory_space<smem>>
    } else {
    }
    %c0 = arith.constant 0 : index
    %c0_1 = arith.constant 0 : index
    %3 = vector.load %arg2[%c0, %c0_1] : memref<4x512xf32, #tpu.memory_space<vmem>>, vector<4x512xf32>
    %c0_2 = arith.constant 0 : index
    %c0_3 = arith.constant 0 : index
    %4 = vector.load %arg3[%c0_2, %c0_3] : memref<4x512xf32, #tpu.memory_space<vmem>>, vector<4x512xf32>
    %5 = arith.subf %3, %4 : vector<4x512xf32>
    %c0_4 = arith.constant 0 : index
    %6 = memref.load %arg5[%c0_4] : memref<1xf32, #tpu.memory_space<smem>>
    %7 = arith.mulf %5, %5 : vector<4x512xf32>
    %8 = vector.shape_cast %7 : vector<4x512xf32> to vector<1x4x512xf32>
    %cst = arith.constant dense<0.000000e+00> : vector<1xf32>
    %9 = vector.multi_reduction <add>, %8, %cst [1, 2] : vector<1x4x512xf32> to vector<1xf32>
    %10 = vector.shape_cast %9 : vector<1xf32> to vector<1x1x1xf32>
    %11 = vector.extract %10[0, 0, 0] : f32 from vector<1x1x1xf32>
    %12 = arith.addf %6, %11 : f32
    %c0_5 = arith.constant 0 : index
    %13 = memref.load %arg5[%c0_5] : memref<1xf32, #tpu.memory_space<smem>>
    memref.store %12, %arg5[%c0_5] : memref<1xf32, #tpu.memory_space<smem>>
    %c0_i32_6 = arith.constant 0 : i32
    %14 = arith.cmpi eq, %arg1, %c0_i32_6 : i32
    %15 = arith.extui %14 : i1 to i32
    %c0_i32_7 = arith.constant 0 : i32
    %16 = arith.cmpi ne, %15, %c0_i32_7 : i32
    scf.if %16 {
      %c0_8 = arith.constant 0 : index
      %17 = memref.load %arg5[%c0_8] : memref<1xf32, #tpu.memory_space<smem>>
      %cst_9 = arith.constant 1.22070313E-4 : f32
      %18 = arith.mulf %17, %cst_9 : f32
      %19 = vector.broadcast %18 : f32 to vector<1x8x128xf32>
      %c0_10 = arith.constant 0 : index
      %c0_11 = arith.constant 0 : index
      %c0_12 = arith.constant 0 : index
      %20 = vector.load %arg4[%c0_10, %c0_11, %c0_12] : memref<1x8x128xf32, #tpu.memory_space<vmem>>, vector<1x8x128xf32>
      tpu.vector_store %arg4[%c0_10, %c0_11, %c0_12], %19 {strides = array<i32>} : memref<1x8x128xf32, #tpu.memory_space<vmem>>, vector<1x8x128xf32>,
    } else {
    }
    return
  }
  func.func @transform_0(%arg0: i32, %arg1: i32) -> (i32, i32) {
    %c1_i32 = arith.constant 1 : i32
    %0 = arith.muli %arg0, %c1_i32 : i32
    %1 = arith.addi %0, %arg1 : i32
    %c0_i32 = arith.constant 0 : i32
    %c0_i32_0 = arith.constant 0 : i32
    return %1, %c0_i32 : i32, i32
  }
  func.func @transform_1(%arg0: i32, %arg1: i32) -> (i32, i32) {
    %c1_i32 = arith.constant 1 : i32
    %0 = arith.muli %arg0, %c1_i32 : i32
    %1 = arith.addi %0, %arg1 : i32
    %c0_i32 = arith.constant 0 : i32
    %c0_i32_0 = arith.constant 0 : i32
    return %1, %c0_i32 : i32, i32
  }
  func.func @transform_2(%arg0: i32, %arg1: i32) -> (i32, i32, i32) {
    %c0_i32 = arith.constant 0 : i32
    %c0_i32_0 = arith.constant 0 : i32
    %c0_i32_1 = arith.constant 0 : i32
    return %arg0, %c0_i32, %c0_i32_0 : i32, i32, i32
  }
}

</mosaic_0001>

<bundles_post_ra>
// kernel: tpu_custom_call.1
= control target key start
LH: loop header
LB: loop body
LE: loop exit
PB: predicated region body
PF: predicated region fallthrough
CT: control target
= control target key end

     0   :  { %7 = vsyncpa [#allocation4], 0  ;;  %s241_s0 = inlined_call_operand.hbm [shape: f32[4,512], index: 0, kind: input, shape index: {}]   ;;  %s242_s1 = inlined_call_operand.hbm [shape: f32[4,512], index: 1, kind: input, shape index: {}]   ;;  %s243_s2 = inlined_call_operand.hbm [shape: f32[1,8,128], index: 2, kind: output, shape index: {}]  }
   0x1   :  { %8 = vsyncpa [#allocation7], 0 }
   0x2   :  { %9 = vsyncpa [#allocation5], 0  ;;  %s187_s9 = smov [#allocation3]   ;;  %s188_s11 = smov [#allocation6]  }
   0x3   :  { %s20_s10 = sshll.u32 %s187_s9, 4  ;;  %s34_s12 = sshll.u32 %s188_s11, 4  ;;  %s21_s10 = int_to_ptr.vmem [resolvable:$true] %s20_s10  ;;  %s35_s12 = int_to_ptr.vmem [resolvable:$true] %s34_s12 }
   0x4   :  { %s115_s15 = scalar_lea.hbm %s241_s0, 256 }
   0x5   :  { %p116_p0 = scmp.ne.s32.totalorder %s241_s0, %s115_s15  ;;  %p119_p1 = scmp.lt.u32.totalorder %s115_s15, %s241_s0 }
   0x7   :  { %p121_p2 = pnand %p119_p1, %p116_p0 }
   0x9   :  { %124 = shalt.err (!%p121_p2)
}
   0xa   :  { %s125_s20 = scalar_lea.vmem %s21_s10, 256  ;;  %p130_p4 = scmp.lt.s32.totalorder %s21_s10, %s21_s10 }
   0xb   :  { %p126_p3 = scmp.ne.s32.totalorder %s21_s10, %s125_s20  ;;  %p131_p5 = scmp.lt.s32.totalorder %s125_s20, %s125_s20 }
   0xd   :  { %p132_p6 = por %p131_p5, %p130_p4 }
   0xf   :  { %p133_p7 = pnand %p132_p6, %p126_p3 }
  0x11   :  { %136 = shalt.err (!%p133_p7)
}
  0x12   :  { %23 = dma.hbm_to_vmem [thread:$0]  %s241_s0, 256, %s21_s10, [#allocation4]  }
  0x13   :  { %s137_s25 = scalar_lea.hbm %s242_s1, 256 }
  0x14   :  { %p138_p8 = scmp.ne.s32.totalorder %s242_s1, %s137_s25  ;;  %p141_p9 = scmp.lt.u32.totalorder %s137_s25, %s242_s1 }
  0x16   :  { %p143_p10 = pnand %p141_p9, %p138_p8 }
  0x18   :  { %146 = shalt.err (!%p143_p10)
}
  0x19   :  { %s147_s30 = scalar_lea.vmem %s35_s12, 256  ;;  %p152_p12 = scmp.lt.s32.totalorder %s35_s12, %s35_s12 }
  0x1a   :  { %p148_p11 = scmp.ne.s32.totalorder %s35_s12, %s147_s30  ;;  %p153_p13 = scmp.lt.s32.totalorder %s147_s30, %s147_s30 }
  0x1c   :  { %p154_p0 = por %p153_p13, %p152_p12 }
  0x1e   :  { %p155_p1 = pnand %p154_p0, %p148_p11 }
  0x20   :  { %158 = shalt.err (!%p155_p1)
}
  0x21   :  { %37 = dma.hbm_to_vmem [thread:$0]  %s242_s1, 256, %s35_s12, [#allocation7]  }
  0x22   :  { %181 = dma.done.wait [#allocation4], 256  }
  0x23   :  { %182 = vsyncadd [#allocation4], 4294967040 }
  0x24   :  { %183 = dma.done.wait [#allocation7], 256  }
  0x25   :  { %184 = vsyncadd [#allocation7], 4294967040  ;;  %v52_v0 = vld [vmem:[#allocation3] sm:$0xff]  ;;  %v53_v1 = vld [vmem:[#allocation3 + $0x8] sm:$0xff]  ;;  %vm67_vm0 = vcmask 1043456   ;;  %s189_s1 = smov [#allocation8]  }
  0x26   :  { %v54_v2 = vld [vmem:[#allocation6] sm:$0xff]  ;;  %v55_v3 = vld [vmem:[#allocation6 + $0x8] sm:$0xff]  ;;  %s100_s4 = sshll.u32 %s189_s1, 4  ;;  %s101_s4 = int_to_ptr.vmem [resolvable:$true] %s100_s4 }
  0x27   :  { %v56_v4 = vsub.f32 %v52_v0, %v54_v2  ;;  %v57_v5 = vsub.f32 %v53_v1, %v55_v3  ;;  %s159_s7 = scalar_lea.vmem %s101_s4, 128  ;;  %p164_p3 = scmp.lt.s32.totalorder %s101_s4, %s101_s4 }
  0x28   :  { %p160_p2 = scmp.ne.s32.totalorder %s101_s4, %s159_s7  ;;  %p165_p4 = scmp.lt.s32.totalorder %s159_s7, %s159_s7 }
  0x29   :  { %v59_v6 = vmul.f32 %v56_v4, %v56_v4  ;;  %v60_v7 = vmul.f32 %v57_v5, %v57_v5 }
  0x2a   :  { %p166_p5 = por %p165_p4, %p164_p3 }
  0x2b   :  { %v63_v8 = vcombine.high %v59_v6, %v59_v6  ;;  %v68_v9 = vsel %vm67_vm0, %v59_v6, 0.0  ;;  %v64_v10 = vcombine.high %v60_v7, %v60_v7  ;;  %v71_v12 = vsel %vm67_vm0, %v60_v7, 0.0 }
  0x2c   :  { %p167_p6 = pnand %p166_p5, %p160_p2 }
  0x2d   :  { %v69_v11 = vsel %vm67_vm0, %v63_v8, 0.0  ;;  %v73_v14 = vsel %vm67_vm0, %v64_v10, 0.0 }
  0x2e   :  { %v70_v13 = vadd.f32 %v69_v11, %v68_v9 }
  0x30   :  { %v72_v15 = vadd.f32 %v71_v12, %v70_v13 }
  0x32   :  { %v74_v16 = vadd.f32 %v73_v14, %v72_v15 }
  0x34   :  { %75 = vadd.xlane.f32.xlu0 %v74_v16 }
  0xc1   :  { %v76_v17 = vpop.xlane.xlu0 %75 }
  0xc2   :  { %v77_v18 = vrot.slane %v76_v17, 4 }
  0xc4   :  { %v78_v19 = vadd.f32 %v77_v18, %v76_v17 }
  0xc6   :  { %v79_v20 = vrot.slane %v78_v19, 2 }
  0xc8   :  { %v80_v21 = vadd.f32 %v79_v20, %v78_v19 }
  0xca   :  { %v81_v22 = vrot.slane %v80_v21, 1 }
  0xcc   :  { %v82_v23 = vadd.f32 %v81_v22, %v80_v21 }
  0xce   :  { %110 = vpush %v82_v23 }
  0xff   :  { %s111_s5 = spop %110 }
 0x100   :  { %s91_s6 = smul.f32 0.00012207031, %s111_s5 }
 0x102   :  { %v92_v24 = vstv %s91_s6 }
 0x103   :  { %93 = vst [vmem:[#allocation8] sm:$0xff] %v92_v24 }
 0x104   :  { %170 = shalt.err (!%p167_p6)
}
 0x105   :  { %s171_s10 = scalar_lea.hbm %s243_s2, 128 }
 0x106   :  { %p172_p7 = scmp.ne.s32.totalorder %s243_s2, %s171_s10  ;;  %p175_p8 = scmp.lt.u32.totalorder %s171_s10, %s243_s2 }
 0x108   :  { %p177_p9 = pnand %p175_p8, %p172_p7 }
 0x10a   :  { %180 = shalt.err (!%p177_p9)
}
 0x10b   :  { %103 = dma.vmem_to_hbm [thread:$0]  %s101_s4, 128, %s243_s2, [#allocation5]  }
 0x10c   :  { %185 = dma.done.wait [#allocation5], 128  }
 0x10d   :  { %186 = vsyncadd [#allocation5], 4294967168 }
 0x10e   :  { %107 = vsyncpa [#allocation4], 1 }
 0x10f   :  { %108 = vsyncpa [#allocation7], 1 }
 0x110   :  { %109 = vsyncpa [#allocation5], 1 }

</bundles_post_ra>
